<compile_context>
chip_gen: v7x
topology: tpu7x:2x2x1
jax: 0.10.0
libtpu: 0.0.40
codegen_flags: <defaults>
</compile_context>

<pallas_src>
import functools

import jax
import jax.numpy as jnp
from jax.experimental import pallas as pl
from jax.experimental.pallas import tpu as pltpu


def _round_up(a, b):
    return (a + b - 1) // b * b


def _vmem_capacity_bytes():
    try:
        return int(pltpu.get_tpu_info().vmem_capacity_bytes)
    except Exception:
        return 64 * 1024 * 1024  # conservative (v7x per-TC)


def _pick_tk(dfp, target):
    """Largest multiple of 128 that divides dfp and is <= target (dfp is a multiple of 128)."""
    n = dfp // 128
    t = max(1, min(target // 128, n))
    for c in range(t, 0, -1):
        if n % c == 0:
            return c * 128
    return 128


def _vmem_estimate(tm, tk, dmp, cbytes, obytes):
    return (2 * tm * dmp * cbytes          # x tile (double-buffered)
            + 2 * dmp * tk * cbytes        # w1 d_ff-slab
            + 2 * tk * dmp * cbytes        # w2 d_ff-slab
            + 2 * (tk + dmp) * 4           # biases (f32)
            + 2 * tm * dmp * obytes        # out tile
            + tm * dmp * 4                 # f32 accumulator scratch
            + tm * tk * 4)                 # f32 h chunk


def _select_tiles(M, dmp, dfp, cbytes, obytes, tile_m, tile_k, vmem_cap):
    # tm: MXU-friendly multiples (256 on v6e/v7x class sizes, 128 otherwise); tiny M stays tiny.
    if M >= 256:
        tm = _round_up(min(tile_m, _round_up(M, 256)), 256)
    elif M >= 128:
        tm = _round_up(min(tile_m, _round_up(M, 128)), 128)
    else:
        tm = _round_up(min(max(tile_m, 16), _round_up(M, 16)), 16)
    tk = _pick_tk(dfp, tile_k)

    budget = int(0.80 * vmem_cap)
    while _vmem_estimate(tm, tk, dmp, cbytes, obytes) > budget and tm > 128:
        tm = max(128, tm // 2)
        if M >= 128:
            tm = _round_up(tm, 128)
    while _vmem_estimate(tm, tk, dmp, cbytes, obytes) > budget and tk > 128:
        tk = _pick_tk(dfp, max(128, tk // 2))
    return tm, tk


def ffn_kernel(x_ref, w1_ref, b1_ref, w2_ref, b2_ref, o_ref, acc_ref):
    """One (M-tile, d_ff-chunk) grid step of Linear -> ReLU -> Dropout(id) -> Linear."""
    k = pl.program_id(1)

    # First matmul on this d_ff chunk; b1 is chunk-local, added every step. f32 accumulate.
    h = jnp.dot(x_ref[...], w1_ref[...], preferred_element_type=jnp.float32)   # (tm, tk)
    h = jnp.maximum(h + b1_ref[...], 0.0)                                       # ReLU (dropout=id)

    # Second matmul: this chunk's contribution to the (tm, d_model) output, accumulated in f32.
    contrib = jnp.dot(h.astype(w2_ref.dtype), w2_ref[...],
                      preferred_element_type=jnp.float32)

    @pl.when(k == 0)
    def _first():
        acc_ref[...] = contrib            # direct write: no zero-init store + reload

    @pl.when(k != 0)
    def _accum():
        acc_ref[...] += contrib

    @pl.when(k == pl.num_programs(1) - 1)
    def _finalize():
        o_ref[...] = (acc_ref[...] + b2_ref[...]).astype(o_ref.dtype)


def prepare_ffn_params(w1, b1, w2, b2, *, compute_dtype=jnp.bfloat16):
    """One-time weight prep: pad d_model/d_ff to x128 and cast weights to compute dtype.

    w1: (d_model, d_ff)  (= w_1.weight.T),  b1: (1, d_ff) or (d_ff,)
    w2: (d_ff, d_model)  (= w_2.weight.T),  b2: (1, d_model) or (d_model,)
    """
    d_model, d_ff = w1.shape
    assert w2.shape == (d_ff, d_model)
    cdtype = jnp.dtype(compute_dtype)
    dmp = _round_up(d_model, 128)
    dfp = _round_up(d_ff, 128)
    w1p = jnp.pad(w1, ((0, dmp - d_model), (0, dfp - d_ff))).astype(cdtype)
    w2p = jnp.pad(w2, ((0, dfp - d_ff), (0, dmp - d_model))).astype(cdtype)
    b1p = jnp.pad(jnp.reshape(b1, (1, d_ff)), ((0, 0), (0, dfp - d_ff))).astype(jnp.float32)
    b2p = jnp.pad(jnp.reshape(b2, (1, d_model)), ((0, 0), (0, dmp - d_model))).astype(jnp.float32)
    return dict(w1=w1p, b1=b1p, w2=w2p, b2=b2p,
                d_model=d_model, d_ff=d_ff, dmp=dmp, dfp=dfp, cdtype=cdtype)


def feed_forward_prepared(x, params, *, tile_m=512, tile_k=256):
    """x: (B, S, d_model); params from prepare_ffn_params."""
    B, S, d_model = x.shape
    assert d_model == params["d_model"]
    dmp, dfp = params["dmp"], params["dfp"]
    cdtype = params["cdtype"]
    M = B * S
    out_dtype = jnp.dtype(x.dtype)
    cb, ob = cdtype.itemsize, out_dtype.itemsize

    vmem_cap = _vmem_capacity_bytes()
    tm, tk = _select_tiles(M, dmp, dfp, cb, ob, tile_m, tile_k, vmem_cap)
    Mp = _round_up(M, tm)
    grid = (Mp // tm, dfp // tk)

    # ---- activations: pad only when actually unaligned, cast to compute dtype -------------
    x2d = x.reshape(M, d_model)
    if Mp != M or dmp != d_model:
        x2d = jnp.pad(x2d, ((0, Mp - M), (0, dmp - d_model)))
    xp = x2d.astype(cdtype)

    # ---- VMEM limit: always set, generation-aware cap --------------------------------------
    vmem_est = _vmem_estimate(tm, tk, dmp, cb, ob)
    vmem_limit = int(min(max(int(1.3 * vmem_est) + (4 << 20), 32 << 20),
                         int(0.9 * vmem_cap)))

    cost = pl.CostEstimate(
        flops=int(4 * Mp * dmp * dfp),                       # two matmuls
        transcendentals=0,
        bytes_accessed=int(xp.size * cb
                           + grid[0] * (params["w1"].size + params["w2"].size) * cb
                           + params["b1"].nbytes + params["b2"].nbytes
                           + Mp * dmp * ob),
    )

    out2d = pl.pallas_call(
        ffn_kernel,
        out_shape=jax.ShapeDtypeStruct((Mp, dmp), out_dtype),
        grid_spec=pltpu.PrefetchScalarGridSpec(
            num_scalar_prefetch=0,
            grid=grid,
            in_specs=[
                pl.BlockSpec((tm, dmp), lambda i, k: (i, 0)),   # x tile (resident over k)
                pl.BlockSpec((dmp, tk), lambda i, k: (0, k)),   # w1 d_ff-slab (streamed)
                pl.BlockSpec((1, tk), lambda i, k: (0, k)),     # b1 chunk
                pl.BlockSpec((tk, dmp), lambda i, k: (k, 0)),   # w2 d_ff-slab (streamed)
                pl.BlockSpec((1, dmp), lambda i, k: (0, 0)),    # b2
            ],
            out_specs=pl.BlockSpec((tm, dmp), lambda i, k: (i, 0)),
            scratch_shapes=[pltpu.VMEM((tm, dmp), jnp.float32)],
        ),
        compiler_params=pltpu.CompilerParams(
            dimension_semantics=("parallel", "arbitrary"),
            vmem_limit_bytes=vmem_limit,
        ),
        cost_estimate=cost,
    )(xp, params["w1"], params["b1"], params["w2"], params["b2"])

    return out2d[:M, :d_model].reshape(B, S, d_model)


def feed_forward(x, w1, b1, w2, b2, *, tile_m=512, tile_k=256, compute_dtype=jnp.bfloat16):
    """Convenience wrapper: prep weights then run. For repeated calls, prep once and reuse."""
    params = prepare_ffn_params(w1, b1, w2, b2, compute_dtype=compute_dtype)
    return feed_forward_prepared(x, params, tile_m=tile_m, tile_k=tile_k)


def feed_forward_ref(x, w1, b1, w2, b2):
    h = jnp.maximum(jnp.dot(x, w1) + b1.reshape(-1), 0.0)
    return jnp.dot(h, w2) + b2.reshape(-1)


def _make_params(key, d_model, d_ff, b_scale):
    k1, kb1, k2, kb2 = jax.random.split(key, 4)
    w1 = jax.random.normal(k1, (d_model, d_ff), dtype=jnp.float32) * (1.0 / d_model ** 0.5)
    b1 = jax.random.normal(kb1, (1, d_ff), dtype=jnp.float32) * b_scale
    w2 = jax.random.normal(k2, (d_ff, d_model), dtype=jnp.float32) * (1.0 / d_ff ** 0.5)
    b2 = jax.random.normal(kb2, (1, d_model), dtype=jnp.float32) * b_scale
    return w1, b1, w2, b2


if __name__ == "__main__":
    key = jax.random.PRNGKey(0)

    # --- Test 1: small module-sized config, f32 compute path (exact vs reference) ----------
    B, S, d_model, d_ff = 2, 8, 32, 64
    kx, kp = jax.random.split(key)
    x = jax.random.normal(kx, (B, S, d_model), dtype=jnp.float32)
    w1, b1, w2, b2 = _make_params(kp, d_model, d_ff, 0.01)

    out = feed_forward(x, w1, b1, w2, b2, compute_dtype=jnp.float32)
    jax.block_until_ready(out)
    ref = feed_forward_ref(x, w1, b1, w2, b2)
    assert out.shape == (B, S, d_model)
    assert jnp.allclose(out, ref, atol=1e-5, rtol=1e-5), "mismatch vs reference (test 1, f32)"

    # --- Test 2: bf16 default path, exercises M-tiling (2 tiles) and d_ff reduction (4 chunks)
    B2, S2, d_model2, d_ff2 = 2, 128, 256, 512
    kx2, kp2 = jax.random.split(jax.random.PRNGKey(0), 2)
    x2 = jax.random.normal(kx2, (B2, S2, d_model2), dtype=jnp.float32)
    w1b, b1b, w2b, b2b = _make_params(kp2, d_model2, d_ff2, 0.1)

    # Hoisted one-time weight prep (bf16), reused across calls.
    prepared = prepare_ffn_params(w1b, b1b, w2b, b2b, compute_dtype=jnp.bfloat16)
    out2 = feed_forward_prepared(x2, prepared, tile_m=128, tile_k=128)
    jax.block_until_ready(out2)
    ref2 = feed_forward_ref(x2, w1b, b1b, w2b, b2b)
    assert out2.shape == (B2, S2, d_model2)
    assert jnp.allclose(out2, ref2, atol=5e-2, rtol=5e-2), "mismatch vs reference (test 2, bf16)"

    # --- Test 3: default tiling heuristics (tm/tk auto-selected, bf16) ----------------------
    out3 = feed_forward_prepared(x2, prepared)   # default tile_m=512, tile_k=256
    jax.block_until_ready(out3)
    assert jnp.allclose(out3, ref2, atol=5e-2, rtol=5e-2), "mismatch vs reference (test 3, bf16)"

    print("KERNEL_OK")
</pallas_src>

<mosaic_0001>
module attributes {stable_mosaic.version = 11 : i64} {
  func.func @ffn_kernel(%arg0: i32, %arg1: i32, %arg2: memref<16x128xf32, #tpu.memory_space<vmem>>, %arg3: memref<128x128xf32, #tpu.memory_space<vmem>>, %arg4: memref<1x128xf32, #tpu.memory_space<vmem>>, %arg5: memref<128x128xf32, #tpu.memory_space<vmem>>, %arg6: memref<1x128xf32, #tpu.memory_space<vmem>>, %arg7: memref<16x128xf32, #tpu.memory_space<vmem>>, %arg8: memref<16x128xf32, #tpu.memory_space<vmem>>) attributes {dimension_semantics = [#tpu.dimension_semantics<parallel>, #tpu.dimension_semantics<arbitrary>], iteration_bounds = array<i64: 1, 1>, scalar_prefetch = 0 : i64, scratch_operands = 1 : i64, tpu.core_type = #tpu.core_type<tc>, window_params = [{transform_indices = @transform_0, window_bounds = array<i64: 16, 128>}, {transform_indices = @transform_1, window_bounds = array<i64: 128, 128>}, {transform_indices = @transform_2, window_bounds = array<i64: 1, 128>}, {transform_indices = @transform_3, window_bounds = array<i64: 128, 128>}, {pipeline_mode = #tpu.pipeline_mode<synchronous>, transform_indices = @transform_4, window_bounds = array<i64: 1, 128>}, {transform_indices = @transform_5, window_bounds = array<i64: 16, 128>}]} {
    %c0 = arith.constant 0 : index
    %c0_0 = arith.constant 0 : index
    %0 = vector.load %arg2[%c0, %c0_0] : memref<16x128xf32, #tpu.memory_space<vmem>>, vector<16x128xf32>
    %c0_1 = arith.constant 0 : index
    %c0_2 = arith.constant 0 : index
    %1 = vector.load %arg3[%c0_1, %c0_2] : memref<128x128xf32, #tpu.memory_space<vmem>>, vector<128x128xf32>
    %cst = arith.constant dense<0.000000e+00> : vector<16x128xf32>
    %2 = tpu.matmul %0, %1, %cst {dimension_numbers = #tpu.dot_dimension_numbers<[1], [0], [0], [1], [0, 0, 1, 1], [], []>} : vector<16x128xf32>, vector<128x128xf32>, vector<16x128xf32> -> vector<16x128xf32>
    %c0_3 = arith.constant 0 : index
    %c0_4 = arith.constant 0 : index
    %3 = vector.load %arg4[%c0_3, %c0_4] : memref<1x128xf32, #tpu.memory_space<vmem>>, vector<1x128xf32>
    %4 = vector.broadcast %3 : vector<1x128xf32> to vector<16x128xf32>
    %5 = arith.addf %2, %4 : vector<16x128xf32>
    %cst_5 = arith.constant 0.000000e+00 : f32
    %6 = vector.broadcast %cst_5 : f32 to vector<16x128xf32>
    %7 = arith.maximumf %5, %6 : vector<16x128xf32>
    %c0_6 = arith.constant 0 : index
    %c0_7 = arith.constant 0 : index
    %8 = vector.load %arg5[%c0_6, %c0_7] : memref<128x128xf32, #tpu.memory_space<vmem>>, vector<128x128xf32>
    %cst_8 = arith.constant dense<0.000000e+00> : vector<16x128xf32>
    %9 = tpu.matmul %7, %8, %cst_8 {dimension_numbers = #tpu.dot_dimension_numbers<[1], [0], [0], [1], [0, 0, 1, 1], [], []>} : vector<16x128xf32>, vector<128x128xf32>, vector<16x128xf32> -> vector<16x128xf32>
    %c0_i32 = arith.constant 0 : i32
    %10 = arith.cmpi eq, %arg1, %c0_i32 : i32
    %11 = arith.extui %10 : i1 to i32
    %c0_i32_9 = arith.constant 0 : i32
    %12 = arith.cmpi ne, %11, %c0_i32_9 : i32
    scf.if %12 {
      %c0_14 = arith.constant 0 : index
      %c0_15 = arith.constant 0 : index
      %19 = vector.load %arg8[%c0_14, %c0_15] : memref<16x128xf32, #tpu.memory_space<vmem>>, vector<16x128xf32>
      tpu.vector_store %arg8[%c0_14, %c0_15], %9 {strides = array<i32>} : memref<16x128xf32, #tpu.memory_space<vmem>>, vector<16x128xf32>,
    } else {
    }
    %c0_i32_10 = arith.constant 0 : i32
    %13 = arith.cmpi ne, %arg1, %c0_i32_10 : i32
    %14 = arith.extui %13 : i1 to i32
    %c0_i32_11 = arith.constant 0 : i32
    %15 = arith.cmpi ne, %14, %c0_i32_11 : i32
    scf.if %15 {
      %c0_14 = arith.constant 0 : index
      %c0_15 = arith.constant 0 : index
      %19 = vector.load %arg8[%c0_14, %c0_15] : memref<16x128xf32, #tpu.memory_space<vmem>>, vector<16x128xf32>
      %20 = arith.addf %19, %9 : vector<16x128xf32>
      %c0_16 = arith.constant 0 : index
      %c0_17 = arith.constant 0 : index
      %21 = vector.load %arg8[%c0_16, %c0_17] : memref<16x128xf32, #tpu.memory_space<vmem>>, vector<16x128xf32>
      tpu.vector_store %arg8[%c0_16, %c0_17], %20 {strides = array<i32>} : memref<16x128xf32, #tpu.memory_space<vmem>>, vector<16x128xf32>,
    } else {
    }
    %c0_i32_12 = arith.constant 0 : i32
    %16 = arith.cmpi eq, %arg1, %c0_i32_12 : i32
    %17 = arith.extui %16 : i1 to i32
    %c0_i32_13 = arith.constant 0 : i32
    %18 = arith.cmpi ne, %17, %c0_i32_13 : i32
    scf.if %18 {
      %c0_14 = arith.constant 0 : index
      %c0_15 = arith.constant 0 : index
      %19 = vector.load %arg8[%c0_14, %c0_15] : memref<16x128xf32, #tpu.memory_space<vmem>>, vector<16x128xf32>
      %c0_16 = arith.constant 0 : index
      %c0_17 = arith.constant 0 : index
      %20 = vector.load %arg6[%c0_16, %c0_17] : memref<1x128xf32, #tpu.memory_space<vmem>>, vector<1x128xf32>
      %21 = vector.broadcast %20 : vector<1x128xf32> to vector<16x128xf32>
      %22 = arith.addf %19, %21 : vector<16x128xf32>
      %c0_18 = arith.constant 0 : index
      %c0_19 = arith.constant 0 : index
      %23 = vector.load %arg7[%c0_18, %c0_19] : memref<16x128xf32, #tpu.memory_space<vmem>>, vector<16x128xf32>
      tpu.vector_store %arg7[%c0_18, %c0_19], %22 {strides = array<i32>} : memref<16x128xf32, #tpu.memory_space<vmem>>, vector<16x128xf32>,
    } else {
    }
    return
  }
  func.func @transform_0(%arg0: i32, %arg1: i32) -> (i32, i32) {
    %c0_i32 = arith.constant 0 : i32
    %c0_i32_0 = arith.constant 0 : i32
    return %arg0, %c0_i32 : i32, i32
  }
  func.func @transform_1(%arg0: i32, %arg1: i32) -> (i32, i32) {
    %c0_i32 = arith.constant 0 : i32
    %c0_i32_0 = arith.constant 0 : i32
    return %c0_i32, %arg1 : i32, i32
  }
  func.func @transform_2(%arg0: i32, %arg1: i32) -> (i32, i32) {
    %c0_i32 = arith.constant 0 : i32
    %c0_i32_0 = arith.constant 0 : i32
    return %c0_i32, %arg1 : i32, i32
  }
  func.func @transform_3(%arg0: i32, %arg1: i32) -> (i32, i32) {
    %c0_i32 = arith.constant 0 : i32
    %c0_i32_0 = arith.constant 0 : i32
    return %arg1, %c0_i32 : i32, i32
  }
  func.func @transform_4(%arg0: i32, %arg1: i32) -> (i32, i32) {
    %c0_i32 = arith.constant 0 : i32
    %c0_i32_0 = arith.constant 0 : i32
    %c0_i32_1 = arith.constant 0 : i32
    return %c0_i32, %c0_i32_0 : i32, i32
  }
  func.func @transform_5(%arg0: i32, %arg1: i32) -> (i32, i32) {
    %c0_i32 = arith.constant 0 : i32
    %c0_i32_0 = arith.constant 0 : i32
    return %arg0, %c0_i32 : i32, i32
  }
}

</mosaic_0001>

<bundles_post_ra>
// kernel: tpu_custom_call.1
= control target key start
LH: loop header
LB: loop body
LE: loop exit
PB: predicated region body
PF: predicated region fallthrough
CT: control target
= control target key end

     0   :  { %10 = vsyncpa [#allocation4], 0  ;;  %s686_s0 = inlined_call_operand.hbm [shape: f32[16,128], index: 0, kind: input, shape index: {}]   ;;  %s687_s1 = inlined_call_operand.hbm [shape: f32[128,128], index: 1, kind: input, shape index: {}]   ;;  %s688_s2 = inlined_call_operand.vmem [shape: f32[1,128], index: 2, kind: input, shape index: {}]   ;;  %s689_s3 = inlined_call_operand.hbm [shape: f32[128,128], index: 3, kind: input, shape index: {}]   ;;  %s690_s4 = inlined_call_operand.vmem [shape: f32[1,128], index: 4, kind: input, shape index: {}]   ;;  %s691_s5 = inlined_call_operand.hbm [shape: f32[16,128], index: 5, kind: output, shape index: {}]  }
   0x1   :  { %11 = vsyncpa [#allocation7], 0 }
   0x2   :  { %12 = vsyncpa [#allocation5], 0  ;;  %s577_s18 = smov [#allocation6]   ;;  %s578_s20 = smov [#allocation3]  }
   0x3   :  { %s30_s19 = sshll.u32 %s577_s18, 4  ;;  %s18_s21 = sshll.u32 %s578_s20, 4  ;;  %s31_s19 = int_to_ptr.vmem [resolvable:$true] %s30_s19  ;;  %s613_s21 = int_to_ptr.vmem [resolvable:$true] %s18_s21 }
   0x4   :  { %s483_s24 = scalar_lea.hbm %s687_s1, 2048 }
   0x5   :  { %p484_p0 = scmp.ne.s32.totalorder %s687_s1, %s483_s24  ;;  %p487_p1 = scmp.lt.u32.totalorder %s483_s24, %s687_s1 }
   0x7   :  { %p489_p2 = pnand %p487_p1, %p484_p0 }
   0x9   :  { %492 = shalt.err (!%p489_p2)
}
   0xa   :  { %s493_s29 = scalar_lea.vmem %s31_s19, 2048  ;;  %p498_p4 = scmp.lt.s32.totalorder %s31_s19, %s31_s19 }
   0xb   :  { %p494_p3 = scmp.ne.s32.totalorder %s31_s19, %s493_s29  ;;  %p499_p5 = scmp.lt.s32.totalorder %s493_s29, %s493_s29 }
   0xd   :  { %p500_p6 = por %p499_p5, %p498_p4 }
   0xf   :  { %p501_p7 = pnand %p500_p6, %p494_p3 }
  0x11   :  { %504 = shalt.err (!%p501_p7)
}
  0x12   :  { %s579_s30 = smov 128   ;;  %s580_s6 = smov 8  }
  0x13   :  { %36 = dma.hbm_to_vmem [thread:$0]  %s687_s1, 2048, %s31_s19, [#allocation7], %s579_s30, %s579_s30, %s580_s6  }
  0x14   :  { %s505_s11 = scalar_lea.hbm %s686_s0, 256 }
  0x15   :  { %p506_p8 = scmp.ne.s32.totalorder %s686_s0, %s505_s11  ;;  %p509_p9 = scmp.lt.u32.totalorder %s505_s11, %s686_s0 }
  0x17   :  { %p511_p10 = pnand %p509_p9, %p506_p8 }
  0x19   :  { %514 = shalt.err (!%p511_p10)
}
  0x1a   :  { %s515_s16 = scalar_lea.vmem %s613_s21, 256  ;;  %p520_p12 = scmp.lt.s32.totalorder %s613_s21, %s613_s21 }
  0x1b   :  { %p516_p11 = scmp.ne.s32.totalorder %s613_s21, %s515_s16  ;;  %p521_p13 = scmp.lt.s32.totalorder %s515_s16, %s515_s16 }
  0x1d   :  { %p522_p0 = por %p521_p13, %p520_p12 }
  0x1f   :  { %p523_p1 = pnand %p522_p0, %p516_p11 }
  0x21   :  { %526 = shalt.err (!%p523_p1)
}
  0x22   :  { %24 = dma.hbm_to_vmem [thread:$0]  %s686_s0, 256, %s613_s21, [#allocation4], %s579_s30, %s579_s30, %s580_s6  }
  0x23   :  { %s581_s18 = smov [#allocation8]   ;;  %s527_s23 = scalar_lea.hbm %s689_s3, 2048 }
  0x24   :  { %s44_s19 = sshll.u32 %s581_s18, 4  ;;  %p528_p2 = scmp.ne.s32.totalorder %s689_s3, %s527_s23  ;;  %s45_s19 = int_to_ptr.vmem [resolvable:$true] %s44_s19 }
  0x25   :  { %p531_p3 = scmp.lt.u32.totalorder %s527_s23, %s689_s3 }
  0x27   :  { %p533_p4 = pnand %p531_p3, %p528_p2 }
  0x29   :  { %536 = shalt.err (!%p533_p4)
}
  0x2a   :  { %s537_s28 = scalar_lea.vmem %s45_s19, 2048  ;;  %p542_p6 = scmp.lt.s32.totalorder %s45_s19, %s45_s19 }
  0x2b   :  { %p538_p5 = scmp.ne.s32.totalorder %s45_s19, %s537_s28  ;;  %p543_p7 = scmp.lt.s32.totalorder %s537_s28, %s537_s28 }
  0x2d   :  { %p544_p8 = por %p543_p7, %p542_p6 }
  0x2f   :  { %p545_p9 = pnand %p544_p8, %p538_p5 }
  0x31   :  { %548 = shalt.err (!%p545_p9)
}
  0x32   :  { %50 = dma.hbm_to_vmem [thread:$0]  %s689_s3, 2048, %s45_s19, [#allocation7], %s579_s30, %s579_s30, %s580_s6  }
  0x33   :  { %571 = dma.done.wait [#allocation4], 256  }
  0x34   :  { %572 = vsyncadd [#allocation4], 4294967040 }
  0x35   :  { %573 = dma.done.wait [#allocation7], 4096  }
  0x36   :  { %574 = vsyncadd [#allocation7], 4294963200  ;;  %v64_v0 = vld [vmem:[#allocation6] sm:$0xff]  ;;  %v65_v1 = vld [vmem:[#allocation6 + $0x8] sm:$0xff]  ;;  %s582_s9 = smov [#allocation9]  }
  0x37   :  { %v66_v2 = vld [vmem:[#allocation6 + $0x10] sm:$0xff]  ;;  %v413_v3 = vpack.c.bf16 %v65_v1, %v64_v0  ;;  %v67_v4 = vld [vmem:[#allocation6 + $0x18] sm:$0xff]  ;;  %v68_v6 = vld [vmem:[#allocation6 + $0x20] sm:$0xff]  ;;  %s292_s10 = sshll.u32 %s582_s9, 4  ;;  %s293_s10 = int_to_ptr.vmem [resolvable:$true] %s292_s10 }
  0x38   :  { %v417_v5 = vpack.c.bf16 %v67_v4, %v66_v2  ;;  %v69_v7 = vld [vmem:[#allocation6 + $0x28] sm:$0xff]  ;;  %v70_v9 = vld [vmem:[#allocation6 + $0x30] sm:$0xff]  ;;  %v71_v10 = vld [vmem:[#allocation6 + $0x38] sm:$0xff]  ;;  %p554_p11 = scmp.lt.s32.totalorder %s293_s10, %s293_s10 }
  0x39   :  { %414 = vmatprep.subr.bf16.mxu0 %v413_v3  ;;  %v421_v8 = vpack.c.bf16 %v69_v7, %v68_v6  ;;  %v62_v11 = vld [vmem:[#allocation3] sm:$0xff]  ;;  %v164_v12 = vld [vmem:[#allocation8] sm:$0xff]  ;;  %v165_v13 = vld [vmem:[#allocation8 + $0x8] sm:$0xff]  ;;  %v425_v20 = vpack.c.bf16 %v71_v10, %v70_v9 }
  0x3a   :  { %416 = vmatpush3.bf16.msra.mxu0 %v413_v3  ;;  %375 = vmatprep.mubr.f32.mxu0 %v62_v11  ;;  %v166_v14 = vld [vmem:[#allocation8 + $0x10] sm:$0xff]  ;;  %v445_v15 = vpack.c.bf16 %v165_v13, %v164_v12  ;;  %v167_v16 = vld [vmem:[#allocation8 + $0x18] sm:$0xff]  ;;  %v168_v18 = vld [vmem:[#allocation8 + $0x20] sm:$0xff] }
  0x3b   :  { %418 = vmatprep.subr.bf16.mxu0 %v417_v5  ;;  %v449_v17 = vpack.c.bf16 %v167_v16, %v166_v14  ;;  %v169_v19 = vld [vmem:[#allocation8 + $0x28] sm:$0xff]  ;;  %v72_v21 = vld [vmem:[#allocation6 + $0x40] sm:$0xff]  ;;  %v170_v24 = vld [vmem:[#allocation8 + $0x30] sm:$0xff] }
  0x3c   :  { %446 = vmatprep.subr.bf16.mxu1 %v445_v15  ;;  %v73_v22 = vld [vmem:[#allocation6 + $0x48] sm:$0xff]  ;;  %v453_v23 = vpack.c.bf16 %v169_v19, %v168_v18  ;;  %v171_v25 = vld [vmem:[#allocation8 + $0x38] sm:$0xff]  ;;  %v74_v27 = vld [vmem:[#allocation6 + $0x50] sm:$0xff] }
  0x3d   :  { %448 = vmatpush3.bf16.msra.mxu1 %v445_v15  ;;  %v429_v26 = vpack.c.bf16 %v73_v22, %v72_v21  ;;  %v75_v28 = vld [vmem:[#allocation6 + $0x58] sm:$0xff]  ;;  %v457_v29 = vpack.c.bf16 %v171_v25, %v170_v24  ;;  %v172_v30 = vld [vmem:[#allocation8 + $0x40] sm:$0xff]  ;;  %v173_v31 = vld [vmem:[#allocation8 + $0x48] sm:$0xff] }
  0x3e   :  { %420 = vmatpush3.bf16.msra.mxu0 %v417_v5  ;;  %450 = vmatprep.subr.bf16.mxu1 %v449_v17  ;;  %v433_v32 = vpack.c.bf16 %v75_v28, %v74_v27  ;;  %v76_v33 = vld [vmem:[#allocation6 + $0x60] sm:$0xff]  ;;  %v77_v34 = vld [vmem:[#allocation6 + $0x68] sm:$0xff]  ;;  %v461_v35 = vpack.c.bf16 %v173_v31, %v172_v30  ;;  %v174_v36 = vld [vmem:[#allocation8 + $0x50] sm:$0xff] }
  0x3f   :  { %422 = vmatprep.subr.bf16.mxu0 %v421_v8  ;;  %v175_v37 = vld [vmem:[#allocation8 + $0x58] sm:$0xff]  ;;  %v437_v38 = vpack.c.bf16 %v77_v34, %v76_v33  ;;  %v78_v39 = vld [vmem:[#allocation6 + $0x70] sm:$0xff]  ;;  %v176_v42 = vld [vmem:[#allocation8 + $0x60] sm:$0xff] }
  0x40   :  { %v79_v40 = vld [vmem:[#allocation6 + $0x78] sm:$0xff]  ;;  %v465_v41 = vpack.c.bf16 %v175_v37, %v174_v36  ;;  %v177_v43 = vld [vmem:[#allocation8 + $0x68] sm:$0xff]  ;;  %v178_v47 = vld [vmem:[#allocation8 + $0x70] sm:$0xff] }
  0x41   :  { %452 = vmatpush3.bf16.msra.mxu1 %v449_v17  ;;  %v441_v44 = vpack.c.bf16 %v79_v40, %v78_v39  ;;  %v469_v45 = vpack.c.bf16 %v177_v43, %v176_v42  ;;  %v63_v46 = vld [vmem:[#allocation3 + $0x8] sm:$0xff]  ;;  %v305_v50 = vld [vmem:[%s688_s2] ss:$0 sm:$0xff]  ;;  %s549_s2 = scalar_lea.vmem %s293_s10, 256 }
  0x42   :  { %424 = vmatpush3.bf16.msra.mxu0 %v421_v8  ;;  %454 = vmatprep.subr.bf16.mxu1 %v453_v23  ;;  %v179_v48 = vld [vmem:[#allocation8 + $0x78] sm:$0xff]  ;;  %v306_v57 = vld [vmem:[%s690_s4] ss:$0 sm:$0xff]  ;;  %p550_p10 = scmp.ne.s32.totalorder %s293_s10, %s549_s2  ;;  %p555_p12 = scmp.lt.s32.totalorder %s549_s2, %s549_s2 }
  0x43   :  { %426 = vmatprep.subr.bf16.mxu0 %v425_v20  ;;  %v473_v49 = vpack.c.bf16 %v179_v48, %v178_v47 }
  0x44   :  { %p556_p13 = por %p555_p12, %p554_p11 }
  0x45   :  { %456 = vmatpush3.bf16.msra.mxu1 %v453_v23 }
  0x46   :  { %428 = vmatpush3.bf16.msra.mxu0 %v425_v20  ;;  %458 = vmatprep.subr.bf16.mxu1 %v457_v29  ;;  %p557_p0 = pnand %p556_p13, %p550_p10 }
  0x47   :  { %430 = vmatprep.subr.bf16.mxu0 %v429_v26 }
  0x49   :  { %460 = vmatpush3.bf16.msra.mxu1 %v457_v29 }
  0x4a   :  { %432 = vmatpush3.bf16.msra.mxu0 %v429_v26  ;;  %462 = vmatprep.subr.bf16.mxu1 %v461_v35 }
  0x4b   :  { %434 = vmatprep.subr.bf16.mxu0 %v433_v32 }
  0x4d   :  { %464 = vmatpush3.bf16.msra.mxu1 %v461_v35 }
  0x4e   :  { %436 = vmatpush3.bf16.msra.mxu0 %v433_v32  ;;  %466 = vmatprep.subr.bf16.mxu1 %v465_v41 }
  0x4f   :  { %438 = vmatprep.subr.bf16.mxu0 %v437_v38 }
  0x51   :  { %468 = vmatpush3.bf16.msra.mxu1 %v465_v41 }
  0x52   :  { %440 = vmatpush3.bf16.msra.mxu0 %v437_v38  ;;  %470 = vmatprep.subr.bf16.mxu1 %v469_v45 }
  0x53   :  { %442 = vmatprep.subr.bf16.mxu0 %v441_v44 }
  0x55   :  { %472 = vmatpush3.bf16.msra.mxu1 %v469_v45 }
  0x56   :  { %444 = vmatpush3.bf16.msra.mxu0 %v441_v44  ;;  %474 = vmatprep.subr.bf16.mxu1 %v473_v49 }
  0x59   :  { %376 = vmatmul.mubr.f32.vlgmr.msra.gmra.mrb[0].mxu0 %v63_v46  ;;  %476 = vmatpush3.bf16.msra.mxu1 %v473_v49 }
 0x12c   :  { %v377_v51 = vpop.f32.mrb[0].mxu0 }
 0x12d   :  { %v159_v52 = vadd.f32 %v377_v51, %v305_v50  ;;  %v153_v53 = vpop.f32.mrb[1].mxu0 }
 0x12e   :  { %v154_v54 = vadd.f32 %v305_v50, %v153_v53 }
 0x12f   :  { %v163_v56 = vmax.f32 %v159_v52, 0.0 }
 0x130   :  { %v162_v55 = vmax.f32 %v154_v54, 0.0 }
 0x132   :  { %410 = vmatprep.mubr.f32.mxu1 %v162_v55 }
 0x133   :  { %411 = vmatmul.mubr.f32.vlgmr.msra.gmra.mrb[0].mxu1 %v163_v56 }
 0x206   :  { %v412_v58 = vpop.f32.mrb[0].mxu1 }
 0x207   :  { %v284_v59 = vadd.f32 %v412_v58, %v306_v57  ;;  %v246_v60 = vpop.f32.mrb[1].mxu1 }
 0x208   :  { %v283_v61 = vadd.f32 %v306_v57, %v246_v60 }
 0x209   :  { %286 = vst [vmem:[#allocation9 + $0x8] sm:$0xff] %v284_v59 }
 0x20a   :  { %285 = vst [vmem:[#allocation9] sm:$0xff] %v283_v61 }
 0x20b   :  { %560 = shalt.err (!%p557_p0)
}
 0x20c   :  { %s561_s4 = scalar_lea.hbm %s691_s5, 256 }
 0x20d   :  { %p562_p1 = scmp.ne.s32.totalorder %s691_s5, %s561_s4  ;;  %p565_p2 = scmp.lt.u32.totalorder %s561_s4, %s691_s5 }
 0x20f   :  { %p567_p3 = pnand %p565_p2, %p562_p1 }
 0x211   :  { %570 = shalt.err (!%p567_p3)
}
 0x212   :  { %298 = dma.vmem_to_hbm [thread:$0]  %s293_s10, 256, %s691_s5, [#allocation5], %s579_s30, %s579_s30, %s580_s6  }
 0x213   :  { %575 = dma.done.wait [#allocation5], 256  }
 0x214   :  { %576 = vsyncadd [#allocation5], 4294967040 }
 0x215   :  { %302 = vsyncpa [#allocation4], 1 }
 0x216   :  { %303 = vsyncpa [#allocation7], 1 }
 0x217   :  { %304 = vsyncpa [#allocation5], 1 }

</bundles_post_ra>
